<compile_context>
chip_gen: v5e
topology: v5e:2x2
jax: 0.10.0
libtpu: 0.0.40
codegen_flags: <defaults>
</compile_context>

<pallas_src>
import functools

import jax
import jax.numpy as jnp
from jax.experimental import pallas as pl
from jax.experimental.pallas import tpu as pltpu


def hbfolder_kernel(lat_ref, w_ref, b_ref, out_ref, *, half):
    # Fused Linear over the full output width (MXU), f32 accumulate.
    z = jnp.dot(lat_ref[...], w_ref[...], preferred_element_type=jnp.float32)
    z = z + b_ref[...]
    # ReLU + 0.0001 (matches F.relu(...) + 0.0001; guarantees positivity).
    z = jnp.maximum(z, 0.0) + 1e-4
    x = z[:, :half]
    y = z[:, half:]
    # log(sqrt(x / y)) == 0.5 * (log x - log y)   (exact math)
    oa = 0.5 * (jnp.log(x) - jnp.log(y))
    # sqrt(x * y)
    ob = jnp.sqrt(x * y)
    # Single lane-dense (tb, lat_size) store.
    out_ref[...] = jnp.concatenate([oa, ob], axis=-1).astype(out_ref.dtype)


def hbfolder_forward(lat, weight, bias, *, lat_size, tb=None, input_dtype=None):
    """lat: (B, lat_size*exp_factor); weight: (lat_size, in_dim) PyTorch layout;
    bias: (lat_size,). Returns (B, lat_size) float32."""
    B, in_dim = lat.shape
    assert lat_size % 2 == 0
    half = lat_size // 2

    # Pre-transpose once outside the kernel (glue only).
    w = weight.T                      # (in_dim, lat_size)
    b = bias.reshape(1, lat_size)     # (1, lat_size)

    if input_dtype is not None:
        # Optional reduced-precision streaming path (elementwise math stays f32).
        lat = lat.astype(input_dtype)
        w = w.astype(input_dtype)

    # Row tile: never the whole batch.  256 rows keeps the per-step input
    # block tiny (~256 KiB f32) while giving large batches a many-step grid.
    if tb is None:
        tb = min(B, 256)
    tb = min(tb, B)

    # Pad rows so the grid divides evenly.  Padded rows see z = relu(bias)+1e-4
    # (strictly positive), so the fold stays finite; they are sliced off below.
    Bp = ((B + tb - 1) // tb) * tb
    if Bp != B:
        lat = jnp.pad(lat, ((0, Bp - B), (0, 0)))
    num_steps = Bp // tb

    lat_spec_kwargs = {}
    if num_steps > 2:
        # Deeper buffering on the only streaming input of a mem-bound kernel.
        lat_spec_kwargs = dict(pipeline_mode=pl.Buffered(3))
    lat_spec = pl.BlockSpec((tb, in_dim), lambda i: (i, 0), **lat_spec_kwargs)

    in_bytes = jnp.dtype(lat.dtype).itemsize
    cost = pl.CostEstimate(
        flops=2 * Bp * in_dim * lat_size + 6 * Bp * lat_size,
        transcendentals=3 * Bp * half,  # 2 logs + 1 sqrt per output pair
        bytes_accessed=(Bp * in_dim + in_dim * lat_size) * in_bytes
        + lat_size * 4
        + Bp * lat_size * 4,
    )

    out = pl.pallas_call(
        functools.partial(hbfolder_kernel, half=half),
        out_shape=jax.ShapeDtypeStruct((Bp, lat_size), jnp.float32),
        grid=(num_steps,),
        in_specs=[
            lat_spec,
            pl.BlockSpec((in_dim, lat_size), lambda i: (0, 0)),
            pl.BlockSpec((1, lat_size), lambda i: (0, 0)),
        ],
        out_specs=pl.BlockSpec((tb, lat_size), lambda i: (i, 0)),
        compiler_params=pltpu.CompilerParams(
            dimension_semantics=("parallel",)),
        cost_estimate=cost,
    )(lat, w, b)

    return out[:B] if Bp != B else out


def hbfolder_ref(lat, weight, bias, *, lat_size):
    """Pure-JAX reference mirroring the PyTorch forward."""
    z = lat @ weight.T + bias
    z = jnp.maximum(z, 0.0) + 1e-4
    half = lat_size // 2
    x, y = z[:, :half], z[:, half:]
    return jnp.concatenate([jnp.log(jnp.sqrt(x / y)), jnp.sqrt(x * y)], axis=1)


if __name__ == "__main__":
    lat_size = 32           # must be even
    exp_factor = 8
    in_dim = lat_size * exp_factor   # 256

    key = jax.random.PRNGKey(0)
    k_in, k_w, k_b, k_in2 = jax.random.split(key, 4)

    # Deterministic Linear init (PyTorch-style U(-1/sqrt(fan_in), 1/sqrt(fan_in)))
    bound = 1.0 / jnp.sqrt(float(in_dim))
    weight = jax.random.uniform(k_w, (lat_size, in_dim), jnp.float32, -bound, bound)
    bias = jax.random.uniform(k_b, (lat_size,), jnp.float32, -bound, bound)

    # --- small case: grid of 1, tb == B ---
    batch = 8
    lat = jax.random.normal(k_in, (batch, in_dim), dtype=jnp.float32)
    out = hbfolder_forward(lat, weight, bias, lat_size=lat_size)
    out = jax.block_until_ready(out)
    ref = hbfolder_ref(lat, weight, bias, lat_size=lat_size)
    assert out.shape == (batch, lat_size)
    assert jnp.allclose(out, ref, atol=1e-5, rtol=1e-5), "mismatch vs reference (small)"

    # --- larger, non-divisible batch: exercises padding, multi-step grid,
    #     and the deeper-buffered streaming-input path ---
    batch2 = 520
    lat2 = jax.random.normal(k_in2, (batch2, in_dim), dtype=jnp.float32)
    out2 = hbfolder_forward(lat2, weight, bias, lat_size=lat_size)
    out2 = jax.block_until_ready(out2)
    ref2 = hbfolder_ref(lat2, weight, bias, lat_size=lat_size)
    assert out2.shape == (batch2, lat_size)
    assert jnp.allclose(out2, ref2, atol=1e-5, rtol=1e-5), "mismatch vs reference (large)"

    # TODO(synk): lane-dense (tb,128) packed store for lat_size=32 only if
    # xprof shows store slots binding (mostly relevant on v5e).
    print("KERNEL_OK")
</pallas_src>

<mosaic_0001>
module attributes {stable_mosaic.version = 11 : i64} {
  func.func @hbfolder_kernel(%arg0: i32, %arg1: memref<8x256xf32, #tpu.memory_space<vmem>>, %arg2: memref<256x32xf32, #tpu.memory_space<vmem>>, %arg3: memref<1x32xf32, #tpu.memory_space<vmem>>, %arg4: memref<8x32xf32, #tpu.memory_space<vmem>>) attributes {dimension_semantics = [#tpu.dimension_semantics<parallel>], iteration_bounds = array<i64: 1>, scalar_prefetch = 0 : i64, scratch_operands = 0 : i64, tpu.core_type = #tpu.core_type<tc>, window_params = [{transform_indices = @transform_0, window_bounds = array<i64: 8, 256>}, {pipeline_mode = #tpu.pipeline_mode<synchronous>, transform_indices = @transform_1, window_bounds = array<i64: 256, 32>}, {pipeline_mode = #tpu.pipeline_mode<synchronous>, transform_indices = @transform_2, window_bounds = array<i64: 1, 32>}, {transform_indices = @transform_3, window_bounds = array<i64: 8, 32>}]} {
    %c0 = arith.constant 0 : index
    %c0_0 = arith.constant 0 : index
    %0 = vector.load %arg1[%c0, %c0_0] : memref<8x256xf32, #tpu.memory_space<vmem>>, vector<8x256xf32>
    %c0_1 = arith.constant 0 : index
    %c0_2 = arith.constant 0 : index
    %1 = vector.load %arg2[%c0_1, %c0_2] : memref<256x32xf32, #tpu.memory_space<vmem>>, vector<256x32xf32>
    %cst = arith.constant dense<0.000000e+00> : vector<8x32xf32>
    %2 = tpu.matmul %0, %1, %cst {dimension_numbers = #tpu.dot_dimension_numbers<[1], [0], [0], [1], [0, 0, 1, 1], [], []>} : vector<8x256xf32>, vector<256x32xf32>, vector<8x32xf32> -> vector<8x32xf32>
    %c0_3 = arith.constant 0 : index
    %c0_4 = arith.constant 0 : index
    %3 = vector.load %arg3[%c0_3, %c0_4] : memref<1x32xf32, #tpu.memory_space<vmem>>, vector<1x32xf32>
    %4 = vector.broadcast %3 : vector<1x32xf32> to vector<8x32xf32>
    %5 = arith.addf %2, %4 : vector<8x32xf32>
    %cst_5 = arith.constant 0.000000e+00 : f32
    %6 = vector.broadcast %cst_5 : f32 to vector<8x32xf32>
    %7 = arith.maximumf %5, %6 : vector<8x32xf32>
    %cst_6 = arith.constant 9.99999974E-5 : f32
    %8 = vector.broadcast %cst_6 : f32 to vector<8x32xf32>
    %9 = arith.addf %7, %8 : vector<8x32xf32>
    %10 = vector.extract_strided_slice %9 {offsets = [0, 0], sizes = [8, 16], strides = [1, 1]} : vector<8x32xf32> to vector<8x16xf32>
    %11 = vector.extract_strided_slice %9 {offsets = [0, 16], sizes = [8, 16], strides = [1, 1]} : vector<8x32xf32> to vector<8x16xf32>
    %12 = math.log %10 : vector<8x16xf32>
    %13 = math.log %11 : vector<8x16xf32>
    %14 = arith.subf %12, %13 : vector<8x16xf32>
    %cst_7 = arith.constant 5.000000e-01 : f32
    %15 = vector.broadcast %cst_7 : f32 to vector<8x16xf32>
    %16 = arith.mulf %15, %14 : vector<8x16xf32>
    %17 = arith.mulf %10, %11 : vector<8x16xf32>
    %18 = math.sqrt %17 : vector<8x16xf32>
    %19 = tpu.concatenate %16, %18 in 1 : vector<8x16xf32>, vector<8x16xf32> -> vector<8x32xf32>
    %c0_8 = arith.constant 0 : index
    %c0_9 = arith.constant 0 : index
    %20 = vector.load %arg4[%c0_8, %c0_9] : memref<8x32xf32, #tpu.memory_space<vmem>>, vector<8x32xf32>
    tpu.vector_store %arg4[%c0_8, %c0_9], %19 {strides = array<i32>} : memref<8x32xf32, #tpu.memory_space<vmem>>, vector<8x32xf32>,
    return
  }
  func.func @transform_0(%arg0: i32) -> (i32, i32) {
    %c0_i32 = arith.constant 0 : i32
    %c0_i32_0 = arith.constant 0 : i32
    return %arg0, %c0_i32 : i32, i32
  }
  func.func @transform_1(%arg0: i32) -> (i32, i32) {
    %c0_i32 = arith.constant 0 : i32
    %c0_i32_0 = arith.constant 0 : i32
    %c0_i32_1 = arith.constant 0 : i32
    return %c0_i32, %c0_i32_0 : i32, i32
  }
  func.func @transform_2(%arg0: i32) -> (i32, i32) {
    %c0_i32 = arith.constant 0 : i32
    %c0_i32_0 = arith.constant 0 : i32
    %c0_i32_1 = arith.constant 0 : i32
    return %c0_i32, %c0_i32_0 : i32, i32
  }
  func.func @transform_3(%arg0: i32) -> (i32, i32) {
    %c0_i32 = arith.constant 0 : i32
    %c0_i32_0 = arith.constant 0 : i32
    return %arg0, %c0_i32 : i32, i32
  }
}

</mosaic_0001>

<bundles_post_ra>
// kernel: tpu_custom_call.1
= control target key start
LH: loop header
LB: loop body
LE: loop exit
PB: predicated region body
PF: predicated region fallthrough
CT: control target
= control target key end

     0   :  { %s309_s0 = inlined_call_operand.vmem [shape: f32[8,256], index: 0, kind: input, shape index: {}]   ;;  %s310_s1 = inlined_call_operand.vmem [shape: f32[256,32], index: 1, kind: input, shape index: {}]   ;;  %s311_s2 = inlined_call_operand.vmem [shape: f32[1,32], index: 2, kind: input, shape index: {}]   ;;  %s312_s3 = inlined_call_operand.hbm [shape: f32[8,32], index: 3, kind: output, shape index: {}]  }
   0x1   :  { %v32_v0 = vld [vmem:[%s310_s1 + $0x78] sm:$0xff]  ;;  %v31_v1 = vld [vmem:[%s310_s1 + $0x70] sm:$0xff]  ;;  %v30_v4 = vld [vmem:[%s310_s1 + $0x68] sm:$0xff] }
   0x2   :  { %v48_v2 = vld [vmem:[%s310_s1 + $0xf8] sm:$0xff]  ;;  %53 = vmatpush.msra.mxu0 %v32_v0  ;;  %v47_v3 = vld [vmem:[%s310_s1 + $0xf0] sm:$0xff]  ;;  %v46_v5 = vld [vmem:[%s310_s1 + $0xe8] sm:$0xff] }
   0x3   :  { %73 = vmatpush.msra.mxu1 %v48_v2  ;;  %v29_v6 = vld [vmem:[%s310_s1 + $0x60] sm:$0xff]  ;;  %v28_v8 = vld [vmem:[%s310_s1 + $0x58] sm:$0xff]  ;;  %v27_v10 = vld [vmem:[%s310_s1 + $0x50] sm:$0xff] }
   0x4   :  { %54 = vmatpush.msra.mxu0 %v31_v1  ;;  %v45_v7 = vld [vmem:[%s310_s1 + $0xe0] sm:$0xff]  ;;  %v44_v9 = vld [vmem:[%s310_s1 + $0xd8] sm:$0xff]  ;;  %v43_v11 = vld [vmem:[%s310_s1 + $0xd0] sm:$0xff] }
   0x5   :  { %74 = vmatpush.msra.mxu1 %v47_v3  ;;  %v26_v12 = vld [vmem:[%s310_s1 + $0x48] sm:$0xff]  ;;  %v25_v14 = vld [vmem:[%s310_s1 + $0x40] sm:$0xff] }
   0x6   :  { %55 = vmatpush.msra.mxu0 %v30_v4  ;;  %v42_v13 = vld [vmem:[%s310_s1 + $0xc8] sm:$0xff]  ;;  %v41_v15 = vld [vmem:[%s310_s1 + $0xc0] sm:$0xff] }
   0x7   :  { %75 = vmatpush.msra.mxu1 %v46_v5 }
   0x8   :  { %56 = vmatpush.msra.mxu0 %v29_v6 }
   0x9   :  { %76 = vmatpush.msra.mxu1 %v45_v7 }
   0xa   :  { %57 = vmatpush.msra.mxu0 %v28_v8 }
   0xb   :  { %77 = vmatpush.msra.mxu1 %v44_v9 }
   0xc   :  { %58 = vmatpush.msra.mxu0 %v27_v10 }
   0xd   :  { %78 = vmatpush.msra.mxu1 %v43_v11 }
   0xe   :  { %8 = vsyncpa [#allocation3], 0  ;;  %59 = vmatpush.msra.mxu0 %v26_v12  ;;  %v24_v16 = vld [vmem:[%s310_s1 + $0x38] sm:$0xff]  ;;  %v23_v18 = vld [vmem:[%s310_s1 + $0x30] sm:$0xff]  ;;  %s135_s4 = sshll.u32 %s312_s3, 4  ;;  %vm124_vm2 = vcmask 130048   ;;  %s136_s4 = int_to_ptr.hbm [resolvable:$true] %s135_s4 }
   0xf   :  { %79 = vmatpush.msra.mxu1 %v42_v13  ;;  %v40_v17 = vld [vmem:[%s310_s1 + $0xb8] sm:$0xff]  ;;  %v39_v19 = vld [vmem:[%s310_s1 + $0xb0] sm:$0xff]  ;;  %v22_v20 = vld [vmem:[%s310_s1 + $0x28] sm:$0xff]  ;;  %vm126_vm3 = vcmask 261120  }
  0x10   :  { %60 = vmatpush.msra.mxu0 %v25_v14  ;;  %v38_v21 = vld [vmem:[%s310_s1 + $0xa8] sm:$0xff]  ;;  %v21_v22 = vld [vmem:[%s310_s1 + $0x20] sm:$0xff]  ;;  %v20_v24 = vld [vmem:[%s310_s1 + $0x18] sm:$0xff] }
  0x11   :  { %80 = vmatpush.msra.mxu1 %v41_v15  ;;  %v37_v23 = vld [vmem:[%s310_s1 + $0xa0] sm:$0xff]  ;;  %v36_v25 = vld [vmem:[%s310_s1 + $0x98] sm:$0xff]  ;;  %v19_v26 = vld [vmem:[%s310_s1 + $0x10] sm:$0xff] }
  0x12   :  { %61 = vmatpush.msra.mxu0 %v24_v16  ;;  %v35_v27 = vld [vmem:[%s310_s1 + $0x90] sm:$0xff]  ;;  %v18_v28 = vld [vmem:[%s310_s1 + $0x8] sm:$0xff]  ;;  %v17_v30 = vld [vmem:[%s310_s1] sm:$0xff] }
  0x13   :  { %81 = vmatpush.msra.mxu1 %v40_v17  ;;  %v34_v29 = vld [vmem:[%s310_s1 + $0x88] sm:$0xff]  ;;  %v33_v31 = vld [vmem:[%s310_s1 + $0x80] sm:$0xff]  ;;  %s178_s1 = smov 112  }
  0x14   :  { %62 = vmatpush.msra.mxu0 %v23_v18  ;;  %v15_v32 = vld [vmem:[%s309_s0] sm:$0xff]  ;;  %v16_v33 = vld [vmem:[%s309_s0 + $0x8] sm:$0xff]  ;;  %s179_s0 = smov 16  }
  0x15   :  { %82 = vmatpush.msra.mxu1 %v39_v19  ;;  %v147_v34 = vld [vmem:[%s311_s2] ss:$0 sm:$0xff]  ;;  %s180_s2 = smov [#allocation2]  }
  0x16   :  { %63 = vmatpush.msra.mxu0 %v22_v20  ;;  %s133_s28 = sshll.u32 %s180_s2, 4  ;;  %s134_s28 = int_to_ptr.vmem [resolvable:$true] %s133_s28 }
  0x17   :  { %83 = vmatpush.msra.mxu1 %v38_v21 }
  0x18   :  { %64 = vmatpush.msra.mxu0 %v21_v22 }
  0x19   :  { %84 = vmatpush.msra.mxu1 %v37_v23 }
  0x1a   :  { %65 = vmatpush.msra.mxu0 %v20_v24 }
  0x1b   :  { %85 = vmatpush.msra.mxu1 %v36_v25 }
  0x1c   :  { %66 = vmatpush.msra.mxu0 %v19_v26 }
  0x1d   :  { %86 = vmatpush.msra.mxu1 %v35_v27 }
  0x1e   :  { %67 = vmatpush.msra.mxu0 %v18_v28 }
  0x1f   :  { %87 = vmatpush.msra.mxu1 %v34_v29 }
  0x20   :  { %68 = vmatpush.msra.mxu0 %v17_v30 }
  0x21   :  { %88 = vmatpush.msra.mxu1 %v33_v31  ;;  %69 = vmatmul.f32.vlgmr.msra.gmra.mxu0 %v15_v32 }
  0x22   :  { %89 = vmatmul.f32.vlgmr.msra.gmra.mxu1 %v16_v33 }
  0x9e   :  { %v70_v35 = vpop.f32.mrf.mxu0 }
  0x9f   :  { %v90_v36 = vpop.f32.mrf.mxu1  ;;  %v71_v37 = vadd.f32 %v147_v34, %v70_v35 }
  0xa1   :  { %v91_v38 = vadd.f32 %v90_v36, %v71_v37 }
  0xa3   :  { %v93_v39 = vmax.f32 %v91_v38, 0.0 }
  0xa5   :  { %v94_v40 = vadd.f32 0.0001, %v93_v39 }
  0xa7   :  { %104 = vrot.lane.b32.xlu0 %v94_v40, %s178_s1  ;;  %148 = vlog2.f32 %v94_v40 }
  0xad   :  { %v149_v41 = vpop.eup %148 }
  0xae   :  { %v96_v42 = vmul.f32 0.6931472, %v149_v41 }
  0xb0   :  { %98 = vrot.lane.b32.xlu0 %v96_v42, %s178_s1 }
 0x119   :  { %v105_v43 = vpop.permute.xlu0 %104 }
 0x11a   :  { %v107_v44 = vmul.f32 %v105_v43, %v94_v40 }
 0x11c   :  { %150 = vrsqrt.f32 %v107_v44  ;;  %vm115_vm0 = vcmp.eq.f32.partialorder %v107_v44, inf  ;;  %v118_v52 = vand.u32 2147483648, %v107_v44  ;;  %vm117_vm1 = vcmp.eq.f32.partialorder %v107_v44, 0.0 }
 0x122   :  { %v151_v45 = vpop.eup %150  ;;  %v99_v55 = vpop.permute.xlu0 %98 }
 0x123   :  { %v109_v46 = vmul.f32 %v151_v45, %v107_v44  ;;  %v101_v56 = vsub.f32 %v96_v42, %v99_v55 }
 0x125   :  { %v110_v47 = vmul.f32 %v151_v45, %v109_v46  ;;  %v102_v57 = vmul.f32 0.5, %v101_v56 }
 0x127   :  { %v111_v48 = vmul.f32 0.5, %v110_v47 }
 0x129   :  { %v112_v49 = vsub.f32 1.5, %v111_v48 }
 0x12b   :  { %v113_v50 = vmul.f32 %v151_v45, %v112_v49 }
 0x12d   :  { %v114_v51 = vmul.f32 %v113_v50, %v107_v44 }
 0x12f   :  { %v116_v53 = vsel %vm115_vm0, %v107_v44, %v114_v51 }
 0x130   :  { %v119_v54 = vsel %vm117_vm1, %v118_v52, %v116_v53 }
 0x131   :  { %121 = vrot.lane.b32.xlu1 %v119_v54, %s179_s0 }
 0x1a3   :  { %v122_v58 = vpop.permute.xlu1 %121 }
 0x1a4   :  { %v125_v59 = vsel %vm124_vm2, %v102_v57, %v122_v58 }
 0x1a5   :  { %127 = vst.msk [vmem:[#allocation2] sm:$0xff] %vm126_vm3, %v125_v59 }
 0x1a6   :  { %138 = dma.vmem_to_hbm [thread:$0]  %s134_s28, 128, %s136_s4, [#allocation3]  }
 0x1a7   :  { %176 = dma.done.wait [#allocation3], 128  }
 0x1a8   :  { %177 = vsyncadd [#allocation3], 4294967168 }
 0x1a9   :  { %143 = vsyncpa [#allocation3], 1 }

</bundles_post_ra>
